<compile_context>
chip_gen: v7x
topology: tpu7x:2x2x1
jax: 0.10.0
libtpu: 0.0.40
codegen_flags: <defaults>
</compile_context>

<pallas_src>
import jax
import jax.numpy as jnp
from jax import lax
from jax.experimental import pallas as pl
from jax.experimental.pallas import tpu as pltpu

# Module hyper-parameters (defaults of DiceLoss.__init__)
GAMMA = 0
SCALE = 1.0
IGNORE_INDEX = -100
EPS = 1e-6
SMOOTH = 0.0
# TODO(synk): only reduction='mean' is implemented in-kernel; 'none'/'sum'
# would return the per-row vector / its sum instead of the normalized mean.


def _round_up(x: int, m: int) -> int:
    return (x + m - 1) // m * m


def _pick_tile_n(c: int, itemsize: int) -> int:
    """Row-tile size so double-buffered input + ~3 f32 temporaries stay well
    inside v7x's 32 MiB scoped VMEM; also fine on v5e/v6e (128 MiB physical)."""
    budget = 8 * 1024 * 1024                       # bytes per in-flight tile set
    per_row = c * (2 * itemsize + 12) + 16         # 2x HBM-dtype dbl-buffer + f32 temps
    tile = max(8, min(1024, budget // per_row))
    return int(tile // 8 * 8)


def _dice_loss_kernel(x_ref, t_ref, part_ref):
    x = x_ref[...].astype(jnp.float32)             # (TILE_N, C)  f32 on-chip
    t = t_ref[...]                                 # (TILE_N, 1)  int32 labels

    classes = lax.broadcasted_iota(jnp.int32, x.shape, 1)      # (TILE_N, C)
    one_hot = (classes == t).astype(jnp.float32)               # ignored rows -> all 0
    valid = (t != IGNORE_INDEX).astype(jnp.float32)            # (TILE_N, 1)

    # softmax pieces over the class (lane) axis
    m = jnp.max(x, axis=-1, keepdims=True)
    e = jnp.exp(x - m)
    inv_denom = pl.reciprocal(jnp.sum(e, axis=-1, keepdims=True), approx=True)

    if GAMMA == 0 and SCALE == 1.0:
        # Default path: p = softmax never materialized.
        #   intersection = sum(e * one_hot) / sum(e)
        #   cardinality  = sum(p) + sum(one_hot) = 1 + 1 = 2 on every valid row
        inter = jnp.sum(e * one_hot, axis=-1, keepdims=True) * inv_denom
        dice = (2.0 * inter + SMOOTH) * (1.0 / (2.0 + EPS + SMOOTH))
    else:
        p = e * inv_denom
        p = SCALE * (1.0 - p) ** GAMMA * p
        inter = jnp.sum(p * one_hot, axis=-1, keepdims=True)
        card = jnp.sum(p, axis=-1, keepdims=True) + valid
        dice = (2.0 * inter + SMOOTH) * pl.reciprocal(card + (EPS + SMOOTH), approx=True)

    per_row = (1.0 - dice) * valid                 # masked / padded rows -> 0

    loss_sum = jnp.sum(per_row)
    valid_sum = jnp.sum(valid)

    # Pack both per-tile partial sums into one lane-dense (1, 8, 128) block:
    # sublane 0 carries loss_sum, sublanes 1..7 carry valid_sum.
    sub = lax.broadcasted_iota(jnp.int32, part_ref.shape, 1)
    part_ref[...] = jnp.where(sub == 0, loss_sum, valid_sum).astype(jnp.float32)


def dice_loss(logits: jax.Array, target: jax.Array, *, tile_n: int | None = None) -> jax.Array:
    """logits: (N, C) float (native dtype, e.g. bf16/f32); target: (N,) int.
    Returns the scalar mean dice loss over rows with target != ignore_index."""
    n, c = logits.shape
    if tile_n is None:
        tile_n = _pick_tile_n(c, jnp.dtype(logits.dtype).itemsize)
    tile_n = min(tile_n, _round_up(n, 8))
    tile_n = max(8, tile_n // 8 * 8)
    n_pad = _round_up(n, tile_n)
    num_tiles = n_pad // tile_n

    t2 = target.astype(jnp.int32).reshape(n, 1)
    if n_pad != n:
        # Padded rows carry ignore_index so they contribute nothing.
        logits = jnp.pad(logits, ((0, n_pad - n), (0, 0)))
        t2 = jnp.pad(t2, ((0, n_pad - n), (0, 0)), constant_values=IGNORE_INDEX)

    # TODO(synk): for extremely large C (block > ~16 MiB) a second class-tiled
    # grid axis with an online logsumexp would be needed; not implemented.
    partials = pl.pallas_call(
        _dice_loss_kernel,
        grid=(num_tiles,),
        in_specs=[
            pl.BlockSpec((tile_n, c), lambda i: (i, 0)),   # logits tile (native dtype)
            pl.BlockSpec((tile_n, 1), lambda i: (i, 0)),   # labels tile
        ],
        out_specs=pl.BlockSpec((1, 8, 128), lambda i: (i, 0, 0)),
        out_shape=jax.ShapeDtypeStruct((num_tiles, 8, 128), jnp.float32),
        compiler_params=pltpu.CompilerParams(
            dimension_semantics=("parallel",),
            vmem_limit_bytes=32 * 1024 * 1024,
        ),
    )(logits, t2)

    loss_sum = jnp.sum(partials[:, 0, 0])
    valid_sum = jnp.sum(partials[:, 1, 0])
    # NOTE: if every row is ignore_index this is 0/0 -> NaN, matching PyTorch's
    # boolean-mask mean over an empty selection.
    return loss_sum / valid_sum


if __name__ == "__main__":
    key = jax.random.PRNGKey(0)
    k_x, k_t = jax.random.split(key)

    N, C = 24, 32  # small shapes consistent with the (N, C) / (N,) contract
    logits = jax.random.normal(k_x, (N, C), dtype=jnp.float32)
    target = jax.random.randint(k_t, (N,), 0, C, dtype=jnp.int32)
    target = target.at[3].set(IGNORE_INDEX)  # exercise the ignore_index path

    # tile_n=8 forces a multi-tile grid even at this tiny size so the tiled
    # streaming reduction + packed-partial combine path is exercised.
    loss = jax.block_until_ready(dice_loss(logits, target, tile_n=8))

    # pure-JAX reference for a sanity check (mirrors the PyTorch module)
    p = jax.nn.softmax(logits, axis=1)
    p = SCALE * (1.0 - p) ** GAMMA * p
    valid = target != IGNORE_INDEX
    one_hot = jax.nn.one_hot(jnp.where(valid, target, 0), C, dtype=p.dtype)
    inter = jnp.sum(p * one_hot, axis=-1)
    card = jnp.sum(p + one_hot, axis=-1)
    dice = (2.0 * inter + SMOOTH) / (card + EPS + SMOOTH)
    ref = jnp.sum((1.0 - dice) * valid) / jnp.sum(valid)

    # Tolerance loosened slightly: the kernel uses the EUP approximate
    # reciprocal for the per-row softmax denominator.
    assert jnp.allclose(loss, ref, rtol=2e-3, atol=1e-4), (loss, ref)
    print("KERNEL_OK")
</pallas_src>

<mosaic_0001>
module attributes {stable_mosaic.version = 11 : i64} {
  func.func @_dice_loss_kernel(%arg0: i32, %arg1: memref<8x32xf32, #tpu.memory_space<vmem>>, %arg2: memref<8x1xi32, #tpu.memory_space<vmem>>, %arg3: memref<1x8x128xf32, #tpu.memory_space<vmem>>) attributes {dimension_semantics = [#tpu.dimension_semantics<parallel>], iteration_bounds = array<i64: 3>, scalar_prefetch = 0 : i64, scratch_operands = 0 : i64, tpu.core_type = #tpu.core_type<tc>, window_params = [{transform_indices = @transform_0, window_bounds = array<i64: 8, 32>}, {transform_indices = @transform_1, window_bounds = array<i64: 8, 1>}, {transform_indices = @transform_2, window_bounds = array<i64: 1, 8, 128>}]} {
    %c0 = arith.constant 0 : index
    %c0_0 = arith.constant 0 : index
    %0 = vector.load %arg1[%c0, %c0_0] : memref<8x32xf32, #tpu.memory_space<vmem>>, vector<8x32xf32>
    %c0_1 = arith.constant 0 : index
    %c0_2 = arith.constant 0 : index
    %1 = vector.load %arg2[%c0_1, %c0_2] : memref<8x1xi32, #tpu.memory_space<vmem>>, vector<8x1xi32>
    %2 = tpu.iota {dimensions = array<i32: 1>} : vector<8x32xi32>
    %3 = vector.broadcast %1 : vector<8x1xi32> to vector<8x32xi32>
    %4 = arith.cmpi eq, %2, %3 : vector<8x32xi32>
    %5 = arith.extui %4 : vector<8x32xi1> to vector<8x32xi32>
    %6 = arith.sitofp %5 : vector<8x32xi32> to vector<8x32xf32>
    %c-100_i32 = arith.constant -100 : i32
    %7 = vector.broadcast %c-100_i32 : i32 to vector<8x1xi32>
    %8 = arith.cmpi ne, %1, %7 : vector<8x1xi32>
    %9 = arith.extui %8 : vector<8x1xi1> to vector<8x1xi32>
    %10 = arith.sitofp %9 : vector<8x1xi32> to vector<8x1xf32>
    %cst = arith.constant dense<0xFF800000> : vector<8xf32>
    %11 = vector.multi_reduction <maximumf>, %0, %cst [1] : vector<8x32xf32> to vector<8xf32>
    %12 = vector.shape_cast %11 : vector<8xf32> to vector<8x1xf32>
    %13 = vector.broadcast %12 : vector<8x1xf32> to vector<8x32xf32>
    %14 = arith.subf %0, %13 : vector<8x32xf32>
    %15 = math.exp %14 : vector<8x32xf32>
    %cst_3 = arith.constant dense<0.000000e+00> : vector<8xf32>
    %16 = vector.multi_reduction <add>, %15, %cst_3 [1] : vector<8x32xf32> to vector<8xf32>
    %17 = vector.shape_cast %16 : vector<8xf32> to vector<8x1xf32>
    %18 = tpu.reciprocal %17 {approx = true} : vector<8x1xf32> -> vector<8x1xf32>
    %19 = arith.mulf %15, %6 : vector<8x32xf32>
    %cst_4 = arith.constant dense<0.000000e+00> : vector<8xf32>
    %20 = vector.multi_reduction <add>, %19, %cst_4 [1] : vector<8x32xf32> to vector<8xf32>
    %21 = vector.shape_cast %20 : vector<8xf32> to vector<8x1xf32>
    %22 = arith.mulf %21, %18 : vector<8x1xf32>
    %cst_5 = arith.constant 2.000000e+00 : f32
    %23 = vector.broadcast %cst_5 : f32 to vector<8x1xf32>
    %24 = arith.mulf %23, %22 : vector<8x1xf32>
    %cst_6 = arith.constant 0.000000e+00 : f32
    %25 = vector.broadcast %cst_6 : f32 to vector<8x1xf32>
    %26 = arith.addf %24, %25 : vector<8x1xf32>
    %cst_7 = arith.constant 0.499999762 : f32
    %27 = vector.broadcast %cst_7 : f32 to vector<8x1xf32>
    %28 = arith.mulf %26, %27 : vector<8x1xf32>
    %cst_8 = arith.constant 1.000000e+00 : f32
    %29 = vector.broadcast %cst_8 : f32 to vector<8x1xf32>
    %30 = arith.subf %29, %28 : vector<8x1xf32>
    %31 = arith.mulf %30, %10 : vector<8x1xf32>
    %32 = vector.shape_cast %31 : vector<8x1xf32> to vector<1x8x1xf32>
    %cst_9 = arith.constant dense<0.000000e+00> : vector<1xf32>
    %33 = vector.multi_reduction <add>, %32, %cst_9 [1, 2] : vector<1x8x1xf32> to vector<1xf32>
    %34 = vector.shape_cast %33 : vector<1xf32> to vector<1x1x1xf32>
    %35 = vector.extract %34[0, 0, 0] : f32 from vector<1x1x1xf32>
    %36 = vector.shape_cast %10 : vector<8x1xf32> to vector<1x8x1xf32>
    %cst_10 = arith.constant dense<0.000000e+00> : vector<1xf32>
    %37 = vector.multi_reduction <add>, %36, %cst_10 [1, 2] : vector<1x8x1xf32> to vector<1xf32>
    %38 = vector.shape_cast %37 : vector<1xf32> to vector<1x1x1xf32>
    %39 = vector.extract %38[0, 0, 0] : f32 from vector<1x1x1xf32>
    %40 = tpu.iota {dimensions = array<i32: 1>} : vector<1x8x128xi32>
    %c0_i32 = arith.constant 0 : i32
    %41 = vector.broadcast %c0_i32 : i32 to vector<1x8x128xi32>
    %42 = arith.cmpi eq, %40, %41 : vector<1x8x128xi32>
    %43 = vector.broadcast %35 : f32 to vector<1x8x128xf32>
    %44 = vector.broadcast %39 : f32 to vector<1x8x128xf32>
    %45 = arith.select %42, %43, %44 : vector<1x8x128xi1>, vector<1x8x128xf32>
    %c0_11 = arith.constant 0 : index
    %c0_12 = arith.constant 0 : index
    %c0_13 = arith.constant 0 : index
    %46 = vector.load %arg3[%c0_11, %c0_12, %c0_13] : memref<1x8x128xf32, #tpu.memory_space<vmem>>, vector<1x8x128xf32>
    tpu.vector_store %arg3[%c0_11, %c0_12, %c0_13], %45 {strides = array<i32>} : memref<1x8x128xf32, #tpu.memory_space<vmem>>, vector<1x8x128xf32>,
    return
  }
  func.func @transform_0(%arg0: i32) -> (i32, i32) {
    %c0_i32 = arith.constant 0 : i32
    %c0_i32_0 = arith.constant 0 : i32
    return %arg0, %c0_i32 : i32, i32
  }
  func.func @transform_1(%arg0: i32) -> (i32, i32) {
    %c0_i32 = arith.constant 0 : i32
    %c0_i32_0 = arith.constant 0 : i32
    return %arg0, %c0_i32 : i32, i32
  }
  func.func @transform_2(%arg0: i32) -> (i32, i32, i32) {
    %c0_i32 = arith.constant 0 : i32
    %c0_i32_0 = arith.constant 0 : i32
    %c0_i32_1 = arith.constant 0 : i32
    return %arg0, %c0_i32, %c0_i32_0 : i32, i32, i32
  }
}

</mosaic_0001>

<bundles_post_ra>
// kernel: tpu_custom_call.1
= control target key start
LH: loop header
LB: loop body
LE: loop exit
PB: predicated region body
PF: predicated region fallthrough
CT: control target
= control target key end

     0   :  { %7 = vsyncpa [#allocation3], 0  ;;  %s554_s0 = inlined_call_operand.vmem [shape: f32[24,32], index: 0, kind: input, shape index: {}]   ;;  %s555_s1 = inlined_call_operand.vmem [shape: s32[24,1], index: 1, kind: input, shape index: {}]   ;;  %s556_s2 = inlined_call_operand.hbm [shape: f32[3,8,128], index: 2, kind: output, shape index: {}]  }
   0x1   :  { %9 = vsyncpa [#allocation3 + $0x1], 0  ;;  %s448_s9 = smov 0   ;;  %s450_s10 = smov 0  }
   0x2   :  { %s452_s11 = smov 0   ;;  %s454_s12 = smov 0  }
   0x3 LB: > { %s469_s13 = sadd.s32 4294967295, %s428_s12   ;;  %s303_s14 = sadd.s32 4294967294, %s428_s12   ;;  %s428_s12 = sphi %s454_s12, %s562_s12   ;;  %s424_s11 = sphi %s452_s11, %s561_s11   ;;  %s420_s10 = sphi %s450_s10, %s560_s10   ;;  %s416_s9 = sphi %s448_s9, %s559_s9  }
   0x4   : > { %s473_s15 = sadd.s32 1, %s428_s12   ;;  %s74_s16 = sadd.s32 1, %s424_s11 }
   0x5   : > { %s71_s17 = ssub.s32 %s428_s12, %s473_s15  ;;  %p84_p0 = scmp.ne.s32.totalorder %s424_s11, %s420_s10 }
   0x6   : > { %p72_p1 = scmp.eq.s32.totalorder %s71_s17, 0  ;;  %p85_p2 = scmp.eq.s32.totalorder %s469_s13, 2 }
   0x7   : > { %p90_p3 = scmp.ne.s32.totalorder %s420_s10, %s416_s9  ;;  %p91_p4 = scmp.eq.s32.totalorder %s303_s14, 2 }
   0x8   : > { %s484_s18 = scalar_select %p72_p1, %s424_s11, %s74_s16  }
   0x9   : > { %p486_p5 = por %p85_p2, %p84_p0  ;;  %p490_p6 = por %p91_p4, %p90_p3 }
   0xa   : > { %p306_p7 = scmp.ge.s32.totalorder %s428_s12, 1  ;;  %p123_p8 = scmp.lt.s32.totalorder %s428_s12, 4 }
   0xc   : > { %p124_p9 = pnand %p306_p7, %p123_p8 }
   0xd   : > { %p148_p10 = scmp.lt.s32.totalorder (!%p124_p9), %s469_s13, 2  ;;  %v430_v0 = vmov (!%p124_p9), 0   ;;  %vm169_vm0 = vcmask (!%p124_p9), 261120   ;;  %v158_v6 = vlaneseq (!%p124_p9)  ;;  %v431_v10 = vmov (!%p124_p9), 0.0   ;;  %s145_s29 = sand.u32 (!%p124_p9), 1, %s420_s10  }
   0xe   : > { %127 = sbr.rel (%p124_p9) target bundleno = 573 (0x23d), region = 28  ;;  %361 = vset.pattern.permute.xlu0 (!%p124_p9), %v430_v0  ;;  %vm190_vm3 = vcmask (!%p124_p9), 7168   ;;  %s307_s30 = sshll.u32 (!%p124_p9), %s145_s29, 3 }
   0xf   : > { %v159_v8 = vand.u32 (!%p124_p9), 127, %v158_v6  ;;  %v212_v41 = vshrl.u32 (!%p124_p9), %v158_v6, 7  ;;  %s313_s3 = sshll.u32 (!%p124_p9), %s469_s13, 7  ;;  %s147_s5 = scalar_lea.vmem (!%p124_p9), [#allocation2], %s307_s30 }
  0x10   : > { %s232_s6 = sshll.u32 (!%p124_p9), %s147_s5, 4  ;;  %s512_s16 = scalar_lea.hbm (!%p124_p9), %s556_s2, %s313_s3  ;;  %s514_s6 = int_to_ptr.vmem [resolvable:$true] %s232_s6 }
  0x11   : > { %vm213_vm4 = vcmp.eq.s32.totalorder (!%p124_p9), %v212_v41, 0  ;;  %s366_s17 = scalar_lea.vmem (!%p124_p9), %s514_s6, 128 }
  0x12   : > { %p367_p11 = scmp.ne.s32.totalorder (!%p124_p9), %s514_s6, %s366_s17 }
  0x14   : > { %p368_p12 = pnand (!%p124_p9), %p367_p11, %p486_p5 }
  0x15   : > { %s149_s21 = scalar_select %p148_p10, %s469_s13, 2 }
  0x16   : > { %s219_s13 = scalar_lea.sflag [#allocation3], %s145_s29  ;;  %p369_p13 = pneg %p368_p12 }
  0x17   : > { %s308_s22 = sshll.u32 %s149_s21, 3  ;;  %s432_s21 = smov [#allocation2]  }
  0x18   : > { %s151_s25 = scalar_lea.vmem %s554_s0, %s308_s22  ;;  %s155_s28 = scalar_lea.vmem %s555_s1, %s308_s22 }
  0x19   : > { %v156_v1 = vld [vmem:[%s151_s25] sm:$0xff]  ;;  %s370_s22 = sshll.u32 %s432_s21, 4  ;;  %s371_s22 = int_to_ptr.vmem [resolvable:$false] %s370_s22 }
  0x1a   : > { %v170_v2 = vsel %vm169_vm0, %v156_v1, -inf  ;;  %v157_v3 = vld [vmem:[%s155_s28] sm:$0xff]  ;;  %s372_s23 = scalar_lea.vmem %s371_s22, 256  ;;  %p373_p0 = scmp.lt.s32.totalorder %s514_s6, %s371_s22 }
  0x1b   : > { %171 = vmax.xlane.f32.xlu0 %v170_v2  ;;  %vm166_vm2 = vcmp.ne.s32.totalorder %v157_v3, 4294967196  ;;  %p374_p1 = scmp.lt.s32.totalorder %s372_s23, %s366_s17 }
  0x1c   : > { %v311_v16 = vsel %vm166_vm2, 1.0, %v431_v10 }
  0x1d   : > { %v201_v26 = vsel %vm190_vm3, %v311_v16, 0.0  ;;  %p375_p2 = por %p374_p1, %p373_p0 }
  0x1f   : > { %p376_p3 = pnand %p375_p2, %p369_p13 }
  0x31   : > { %161 = vperm.xlu0 %361, %v157_v3  }
  0xa8   : > { %v172_v4 = vpop.xlane.xlu0 %171 }
  0xa9   : > { %v173_v5 = vsub.f32 %v156_v1, %v172_v4 }
  0xab   : > { %v174_v7 = vmul.f32 1.442695, %v173_v5 }
  0xad   : > { %362 = vpow2.f32 %v174_v7 }
  0xb0   : > { %v162_v9 = vpop.permute.xlu0 %161 }
  0xb1   : > { %vm163_vm1 = vcmp.eq.s32.totalorder %v159_v8, %v162_v9 }
  0xb2   : > { %v310_v11 = vsel %vm163_vm1, 1.0, %v431_v10 }
  0xb7   : > { %v363_v12 = vpop.eup %362 }
  0xb8   : > { %v176_v13 = vsel %vm169_vm0, %v363_v12, 0.0  ;;  %v180_v14 = vmul.f32 %v363_v12, %v310_v11 }
  0xb9   : > { %177 = vadd.xlane.f32.xlu1 %v176_v13 }
  0xba   : > { %v181_v15 = vsel %vm169_vm0, %v180_v14, 0.0 }
  0xbd   : > { %182 = vadd.xlane.f32.xlu1 %v181_v15 }
 0x146   : > { %v178_v17 = vpop.xlane.xlu1 %177 }
 0x147   : > { %364 = vrcp.f32 %v178_v17 }
 0x14a   : > { %v183_v19 = vpop.xlane.xlu1 %182 }
 0x151   : > { %v365_v18 = vpop.eup %364 }
 0x152   : > { %v184_v20 = vmul.f32 %v365_v18, %v183_v19 }
 0x154   : > { %v185_v21 = vmul.f32 2.0, %v184_v20 }
 0x156   : > { %v187_v22 = vmul.f32 0.49999976, %v185_v21 }
 0x158   : > { %v188_v23 = vsub.f32 1.0, %v187_v22 }
 0x15a   : > { %v189_v24 = vmul.f32 %v311_v16, %v188_v23 }
 0x15c   : > { %v191_v25 = vsel %vm190_vm3, %v189_v24, 0.0 }
 0x15d   : > { %192 = vadd.xlane.f32.xlu1 %v191_v25 }
 0x161   : > { %202 = vadd.xlane.f32.xlu1 %v201_v26 }
 0x1ea   : > { %v193_v27 = vpop.xlane.xlu1 %192 }
 0x1eb   : > { %v194_v28 = vrot.slane %v193_v27, 4 }
 0x1ed   : > { %v195_v29 = vadd.f32 %v194_v28, %v193_v27 }
 0x1ee   : > { %v203_v30 = vpop.xlane.xlu1 %202 }
 0x1ef   : > { %v196_v31 = vrot.slane %v195_v29, 2  ;;  %v204_v32 = vrot.slane %v203_v30, 4 }
 0x1f1   : > { %v205_v33 = vadd.f32 %v204_v32, %v203_v30  ;;  %v197_v34 = vadd.f32 %v196_v31, %v195_v29 }
 0x1f3   : > { %v206_v35 = vrot.slane %v205_v33, 2  ;;  %v198_v36 = vrot.slane %v197_v34, 1 }
 0x1f5   : > { %v207_v37 = vadd.f32 %v206_v35, %v205_v33  ;;  %v199_v38 = vadd.f32 %v198_v36, %v197_v34 }
 0x1f7   : > { %316 = vpush %v199_v38  ;;  %v208_v39 = vrot.slane %v207_v37, 1 }
 0x1f9   : > { %v209_v40 = vadd.f32 %v208_v39, %v207_v37 }
 0x1fb   : > { %318 = vpush %v209_v40 }
 0x228   : > { %s317_s4 = spop %316 }
 0x229   : > { %v214_v42 = vstv %s317_s4 }
 0x22c   : > { %s319_s7 = spop %318 }
 0x22d   : > { %v215_v43 = vstv %s319_s7 }
 0x22e   : > { %v216_v44 = vsel %vm213_vm4, %v214_v42, %v215_v43 }
 0x22f   : > { %217 = vst [vmem:[%s147_s5] sm:$0xff] %v216_v44 }
 0x230   : > { %379 = shalt.err (!%p376_p3)
}
 0x231   : > { %s380_s24 = scalar_lea.hbm %s512_s16, 128  ;;  %s384_s27 = scalar_lea.hbm %s556_s2, 384 }
 0x232   : > { %p381_p4 = scmp.ne.s32.totalorder %s512_s16, %s380_s24  ;;  %p385_p9 = scmp.lt.u32.totalorder %s512_s16, %s556_s2 }
 0x233   : > { %p386_p10 = scmp.lt.u32.totalorder %s384_s27, %s380_s24  ;;  %p388_p12 = scmp.lt.u32.totalorder %s380_s24, %s512_s16 }
 0x234   : > { %p382_p7 = pnand %p381_p4, %p486_p5 }
 0x235   : > { %p387_p11 = por %p386_p10, %p385_p9 }
 0x236   : > { %p383_p8 = pneg %p382_p7 }
 0x237   : > { %p389_p13 = por %p388_p12, %p387_p11 }
 0x239   : > { %p390_p0 = pnand %p389_p13, %p383_p8 }
 0x23b   : > { %393 = shalt.err (!%p390_p0)
}
 0x23c   : > { %320 = dma.vmem_to_hbm [thread:$0]  (%p486_p5), %s514_s6, 128, %s512_s16, %s219_s13  }
 0x23d PF: > { %p326_p1 = scmp.ge.s32.totalorder %s428_s12, 2  ;;  %s244_s30 = sand.u32 1, %s416_s9  }
 0x23e   : > { %s245_s3 = scalar_lea.sflag [#allocation3], %s244_s30 }
 0x23f   : > { %p323_p2 = pnand %p326_p1, %p490_p6 }
 0x241   : > { %411 = dma.done.wait (!%p323_p2), %s245_s3, 128  }
 0x242   : > { %413 = vsyncadd (!%p323_p2), %s245_s3, 4294967168  ;;  %p12_p3 = scmp.ge.s32.totalorder %s473_s15, 5   ;;  %s559_s9 = smov %s420_s10 }
 0x243   : > { %s560_s10 = smov %s424_s11  ;;  %s561_s11 = smov %s484_s18 }
 0x244   : > { %s562_s12 = smov %s473_s15  ;;  %14 = sbr.rel (!%p12_p3) target bundleno = 3 (0x3), region = 66 }
 0x24b   :  { %250 = vsyncpa [#allocation3], 1 }
 0x24c   :  { %252 = vsyncpa [#allocation3 + $0x1], 1 }

</bundles_post_ra>
